<compile_context>
chip_gen: v6e
topology: v6e:2x2x1
jax: 0.10.0
libtpu: 0.0.40
codegen_flags: <defaults>
</compile_context>

<pallas_src>
import functools

import jax
import jax.numpy as jnp
from jax import lax
from jax.experimental import pallas as pl
from jax.experimental.pallas import tpu as pltpu

_LANES = 128
_SUBLANES = 8
_ALIGN = _SUBLANES * _LANES      # 1024-element padding granularity (4 KiB f32)
_CHUNK_ROWS = 1024               # rows per in-kernel sub-chunk (512 KiB f32 temps)

_ARBITRARY = getattr(pltpu, "ARBITRARY", "arbitrary")
_CORE_PARALLEL = getattr(pltpu, "CORE_PARALLEL", _ARBITRARY)


def _cdiv(a, b):
    return -(-a // b)


def _round_up(a, b):
    return _cdiv(a, b) * b


def _device_kind():
    try:
        return jax.devices()[0].device_kind.lower()
    except Exception:
        return ""


def _tile_rows_cap():
    kind = _device_kind()
    # v6e / v7x: 4 MiB input blocks (16 MiB double-buffered for the 2 inputs).
    # v5e / unknown: 2 MiB blocks, safely under the 16 MiB default scoped VMEM.
    if ("v6" in kind) or ("v7" in kind) or ("7x" in kind):
        return 8192
    return 4096


def _num_tensorcores():
    # Among the targets of interest, only v7x exposes 2 TensorCores per device.
    kind = _device_kind()
    return 2 if (("v7" in kind) or ("7x" in kind)) else 1


def _focal_loss_kernel(pred_ref, tgt_ref, out_ref, *, gamma, alpha,
                       hard_targets, n_valid, tile_rows, chunk_rows):
    """Accumulates the focal-loss sum of this core's tiles into its (1,8,128)
    f32 output block.  Out-of-range elements (lane/row padding and rows past
    the array) are masked by the true element count `n_valid`."""
    step = pl.program_id(1)
    # Logical (unclamped) global row offset of this tile; blocks whose logical
    # offset is past the data are fully masked below (the index_map clamps the
    # physical block so the DMA is always in bounds).
    tile_row0 = (pl.program_id(0) * pl.num_programs(1) + step) * tile_rows

    @pl.when(step == 0)
    def _():
        out_ref[...] = jnp.zeros(out_ref.shape, jnp.float32)

    g_int = int(round(gamma))
    integral_gamma = abs(gamma - g_int) < 1e-12 and 0 <= g_int <= 8

    def per_element_loss(x, t):
        # exp(-|x|) feeds the numerically stable BCE (and the sigmoid path).
        e = jnp.exp(-jnp.abs(x))
        bce = jnp.maximum(x, 0.0) - x * t + jnp.log1p(e)

        if hard_targets:
            # For 0/1 targets p_t == exp(-bce) exactly: skips the whole
            # sigmoid / blend chain (big VALU saving, same EUP op count).
            one_m_pt = 1.0 - jnp.exp(-bce)
        else:
            d = 1.0 + e
            r = pl.reciprocal(d, approx=True)    # EUP vrcp
            r = r * (2.0 - d * r)                # one Newton step (VPU)
            p = jnp.where(x >= 0.0, r, e * r)    # sigmoid(x)
            one_m_pt = p + t - 2.0 * p * t       # == 1 - p_t (soft-target safe)

        if integral_gamma:
            if g_int == 0:
                modulator = jnp.ones_like(one_m_pt)
            else:
                modulator = one_m_pt
                for _ in range(g_int - 1):       # pow -> repeated multiplies
                    modulator = modulator * one_m_pt
        else:
            modulator = jnp.maximum(one_m_pt, 0.0) ** gamma

        if alpha != 0.5:
            alpha_t = alpha * t + (1.0 - alpha) * (1.0 - t)
            return alpha_t * modulator * bce
        return modulator * bce                   # PyTorch uses alpha_t = 1 here

    chunk_elems = chunk_rows * _LANES

    def chunk_body(c, carry):
        row0 = pl.multiple_of(c * chunk_rows, _SUBLANES)
        chunk_first = (tile_row0 + c * chunk_rows) * _LANES

        @pl.when(chunk_first < n_valid)          # skip fully-padded chunks
        def _():
            x = pred_ref[pl.ds(row0, chunk_rows), :].astype(jnp.float32)
            t = tgt_ref[pl.ds(row0, chunk_rows), :].astype(jnp.float32)
            loss = per_element_loss(x, t)

            @pl.when(chunk_first + chunk_elems <= n_valid)   # fully valid chunk
            def _():
                out_ref[0] += loss.reshape(
                    chunk_rows // _SUBLANES, _SUBLANES, _LANES).sum(axis=0)

            @pl.when(chunk_first + chunk_elems > n_valid)    # boundary chunk
            def _():
                idx = (chunk_first
                       + lax.broadcasted_iota(jnp.int32, loss.shape, 0) * _LANES
                       + lax.broadcasted_iota(jnp.int32, loss.shape, 1))
                masked = jnp.where(idx < n_valid, loss, 0.0)
                out_ref[0] += masked.reshape(
                    chunk_rows // _SUBLANES, _SUBLANES, _LANES).sum(axis=0)

        return carry

    lax.fori_loop(0, tile_rows // chunk_rows, chunk_body, 0)


def focal_loss(pred, target, gamma=2.0, alpha=0.5, hard_targets=None):
    """Pallas TPU focal loss; scalar float32 mean over all elements.

    pred may be f32 or bf16 and target may be float / int / bool — both are
    upcast to f32 inside the kernel (no wrapper-side cast, no extra HBM pass).
    hard_targets=True enables the sigmoid-free fast path (exact for 0/1
    targets); default None infers it from the target dtype so soft float
    targets keep the exact blend.
    """
    assert pred.shape == target.shape
    n_total = int(pred.size)
    assert n_total > 0
    assert n_total < 2 ** 31  # in-kernel element indices are int32

    if hard_targets is None:
        hard_targets = (target.dtype == jnp.bool_
                        or jnp.issubdtype(target.dtype, jnp.integer))

    x = pred.reshape(-1)
    t = target.reshape(-1)

    # Lane-dense (rows, 128) view.  Pad with zeros only when N is not a
    # multiple of 1024 (kernel masks by true count, so pad values don't
    # matter); aligned inputs are fed with no extra HBM pass at all.
    n_pad = _round_up(n_total, _ALIGN)
    if n_pad != n_total:
        x = jnp.pad(x, (0, n_pad - n_total))
        t = jnp.pad(t, (0, n_pad - n_total))
    rows = n_pad // _LANES                      # multiple of 8
    x2 = x.reshape(rows, _LANES)
    t2 = t.reshape(rows, _LANES)

    tm_cap = _tile_rows_cap()
    if rows <= _CHUNK_ROWS:
        chunk = rows
        tm = rows                               # single exact block
    else:
        chunk = _CHUNK_ROWS
        tm = min(tm_cap, (rows // chunk) * chunk)   # multiple of chunk, <= rows
    steps_total = _cdiv(rows, tm)

    num_cores = _num_tensorcores()
    if steps_total < 2:
        num_cores = 1
    steps_per_core = _cdiv(steps_total, num_cores)
    last_block = steps_total - 1

    kernel = functools.partial(
        _focal_loss_kernel, gamma=float(gamma), alpha=float(alpha),
        hard_targets=bool(hard_targets), n_valid=n_total,
        tile_rows=tm, chunk_rows=chunk)

    def in_map(c, i):
        # Clamp so the DMA'd block is always in bounds; duplicated (clamped)
        # blocks contribute nothing because the kernel masks on the logical
        # (unclamped) element index.
        return (jnp.minimum(c * steps_per_core + i, last_block), 0)

    vmem_limit = 48 * 1024 * 1024 if tm > 4096 else None

    def run(core_sem):
        return pl.pallas_call(
            kernel,
            out_shape=jax.ShapeDtypeStruct((num_cores, _SUBLANES, _LANES),
                                           jnp.float32),
            grid_spec=pltpu.PrefetchScalarGridSpec(
                num_scalar_prefetch=0,
                grid=(num_cores, steps_per_core),
                in_specs=[pl.BlockSpec((tm, _LANES), in_map),
                          pl.BlockSpec((tm, _LANES), in_map)],
                out_specs=pl.BlockSpec((1, _SUBLANES, _LANES),
                                       lambda c, i: (c, 0, 0)),
            ),
            compiler_params=pltpu.CompilerParams(
                dimension_semantics=(core_sem, _ARBITRARY),
                vmem_limit_bytes=vmem_limit),
        )(x2, t2)

    if num_cores == 2:
        try:
            partials = run(_CORE_PARALLEL)      # shard leading axis over 2 TCs
        except Exception:
            partials = run(_ARBITRARY)          # safe serial fallback
    else:
        partials = run(_ARBITRARY)

    # Per-core (8,128) partials -> one small XLA reduce, then * 1/N (true N).
    return jnp.sum(partials) * jnp.float32(1.0 / n_total)


def _reference_focal_loss(pred, target, gamma=2.0, alpha=0.5):
    x = pred.astype(jnp.float32)
    t = target.astype(jnp.float32)
    bce = jnp.maximum(x, 0.0) - x * t + jnp.log1p(jnp.exp(-jnp.abs(x)))
    p = jax.nn.sigmoid(x)
    p_t = p * t + (1.0 - p) * (1.0 - t)
    alpha_t = (alpha * t + (1.0 - alpha) * (1.0 - t)) if alpha != 0.5 else 1.0
    return jnp.mean(alpha_t * (1.0 - p_t) ** gamma * bce)


if __name__ == "__main__":
    key = jax.random.PRNGKey(0)
    k1, k2, k3, k4, k5, k6 = jax.random.split(key, 6)

    # Main case: NCHW logit map, module defaults (gamma=2, alpha=0.5),
    # hard 0/1 targets -> sigmoid-free fast path, no padding copy at all.
    B, C, H, W = 2, 4, 16, 16
    pred = jax.random.normal(k1, (B, C, H, W), dtype=jnp.float32) * 2.0
    target = (jax.random.uniform(k2, (B, C, H, W)) > 0.5).astype(jnp.float32)
    out = jax.block_until_ready(
        focal_loss(pred, target, gamma=2.0, alpha=0.5, hard_targets=True))
    ref = _reference_focal_loss(pred, target, gamma=2.0, alpha=0.5)
    assert jnp.allclose(out, ref, atol=1e-4, rtol=1e-4), (out, ref)

    # Ragged case: lane padding + in-kernel masking, general (soft-target
    # safe) sigmoid path, alpha != 0.5 branch.
    shp = (2, 3, 7, 5)  # 210 elements, not a multiple of 128
    pred2 = jax.random.normal(k3, shp, dtype=jnp.float32) * 3.0
    target2 = (jax.random.uniform(k4, shp) > 0.5).astype(jnp.float32)
    out2 = jax.block_until_ready(focal_loss(pred2, target2, gamma=2.0, alpha=0.25))
    ref2 = _reference_focal_loss(pred2, target2, gamma=2.0, alpha=0.25)
    assert jnp.allclose(out2, ref2, atol=1e-4, rtol=1e-4), (out2, ref2)

    # Multi-step case: 2 grid steps with a partial last tile (row masking) and
    # bf16 logits streamed straight into the kernel (upcast in VMEM).
    shp3 = (5, 11, 32, 80)  # 140800 elements
    pred3 = (jax.random.normal(k5, shp3, dtype=jnp.float32) * 2.0).astype(jnp.bfloat16)
    target3 = (jax.random.uniform(k6, shp3) > 0.5).astype(jnp.float32)
    out3 = jax.block_until_ready(focal_loss(pred3, target3, gamma=2.0, alpha=0.5))
    ref3 = _reference_focal_loss(pred3, target3, gamma=2.0, alpha=0.5)
    assert jnp.allclose(out3, ref3, atol=1e-4, rtol=1e-4), (out3, ref3)

    print("KERNEL_OK")
</pallas_src>

<mosaic_0001>
module attributes {stable_mosaic.version = 11 : i64} {
  func.func @_focal_loss_kernel(%arg0: i32, %arg1: i32, %arg2: memref<16x128xf32, #tpu.memory_space<vmem>>, %arg3: memref<16x128xf32, #tpu.memory_space<vmem>>, %arg4: memref<1x8x128xf32, #tpu.memory_space<vmem>>) attributes {dimension_semantics = [#tpu.dimension_semantics<arbitrary>, #tpu.dimension_semantics<arbitrary>], iteration_bounds = array<i64: 1, 1>, scalar_prefetch = 0 : i64, scratch_operands = 0 : i64, tpu.core_type = #tpu.core_type<tc>, window_params = [{transform_indices = @transform_0, window_bounds = array<i64: 16, 128>}, {transform_indices = @transform_1, window_bounds = array<i64: 16, 128>}, {transform_indices = @transform_2, window_bounds = array<i64: 1, 8, 128>}]} {
    %c1_i32 = arith.constant 1 : i32
    %0 = arith.muli %arg0, %c1_i32 : i32
    %1 = arith.addi %0, %arg1 : i32
    %c16_i32 = arith.constant 16 : i32
    %2 = arith.muli %1, %c16_i32 : i32
    %c0_i32 = arith.constant 0 : i32
    %3 = arith.cmpi eq, %arg1, %c0_i32 : i32
    %4 = arith.extui %3 : i1 to i32
    %c0_i32_0 = arith.constant 0 : i32
    %5 = arith.cmpi ne, %4, %c0_i32_0 : i32
    scf.if %5 {
      %cst = arith.constant 0.000000e+00 : f32
      %14 = vector.broadcast %cst : f32 to vector<1x8x128xf32>
      %c0 = arith.constant 0 : index
      %c0_6 = arith.constant 0 : index
      %c0_7 = arith.constant 0 : index
      %15 = vector.load %arg4[%c0, %c0_6, %c0_7] : memref<1x8x128xf32, #tpu.memory_space<vmem>>, vector<1x8x128xf32>
      tpu.vector_store %arg4[%c0, %c0_6, %c0_7], %14 {strides = array<i32>} : memref<1x8x128xf32, #tpu.memory_space<vmem>>, vector<1x8x128xf32>,
    } else {
    }
    %c0_i32_1 = arith.constant 0 : i32
    %c16_i32_2 = arith.constant 16 : i32
    %6 = arith.muli %c0_i32_1, %c16_i32_2 : i32
    %7 = tpu.assume_multiple %6, 8 : i32
    %c16_i32_3 = arith.constant 16 : i32
    %8 = arith.muli %c0_i32_1, %c16_i32_3 : i32
    %9 = arith.addi %2, %8 : i32
    %c128_i32 = arith.constant 128 : i32
    %10 = arith.muli %9, %c128_i32 : i32
    %c2048_i32 = arith.constant 2048 : i32
    %11 = arith.cmpi slt, %10, %c2048_i32 : i32
    %12 = arith.extui %11 : i1 to i32
    %c0_i32_4 = arith.constant 0 : i32
    %13 = arith.cmpi ne, %12, %c0_i32_4 : i32
    scf.if %13 {
      %14 = arith.index_cast %7 : i32 to index
      %c0 = arith.constant 0 : index
      %15 = vector.load %arg2[%14, %c0] : memref<16x128xf32, #tpu.memory_space<vmem>>, vector<16x128xf32>
      %16 = arith.index_cast %7 : i32 to index
      %c0_6 = arith.constant 0 : index
      %17 = vector.load %arg3[%16, %c0_6] : memref<16x128xf32, #tpu.memory_space<vmem>>, vector<16x128xf32>
      %18 = math.absf %15 : vector<16x128xf32>
      %cst = arith.constant 0.000000e+00 : f32
      %19 = vector.broadcast %cst : f32 to vector<16x128xf32>
      %20 = arith.subf %19, %18 : vector<16x128xf32>
      %21 = math.exp %20 : vector<16x128xf32>
      %cst_7 = arith.constant 0.000000e+00 : f32
      %22 = vector.broadcast %cst_7 : f32 to vector<16x128xf32>
      %23 = arith.maximumf %15, %22 : vector<16x128xf32>
      %24 = arith.mulf %15, %17 : vector<16x128xf32>
      %25 = arith.subf %23, %24 : vector<16x128xf32>
      %26 = math.log1p %21 : vector<16x128xf32>
      %27 = arith.addf %25, %26 : vector<16x128xf32>
      %cst_8 = arith.constant 0.000000e+00 : f32
      %28 = vector.broadcast %cst_8 : f32 to vector<16x128xf32>
      %29 = arith.subf %28, %27 : vector<16x128xf32>
      %30 = math.exp %29 : vector<16x128xf32>
      %cst_9 = arith.constant 1.000000e+00 : f32
      %31 = vector.broadcast %cst_9 : f32 to vector<16x128xf32>
      %32 = arith.subf %31, %30 : vector<16x128xf32>
      %33 = arith.mulf %32, %32 : vector<16x128xf32>
      %34 = arith.mulf %33, %27 : vector<16x128xf32>
      %c2048_i32_10 = arith.constant 2048 : i32
      %35 = arith.addi %10, %c2048_i32_10 : i32
      %c2048_i32_11 = arith.constant 2048 : i32
      %36 = arith.cmpi sle, %35, %c2048_i32_11 : i32
      %37 = arith.extui %36 : i1 to i32
      %c0_i32_12 = arith.constant 0 : i32
      %38 = arith.cmpi ne, %37, %c0_i32_12 : i32
      scf.if %38 {
        %c0_16 = arith.constant 0 : index
        %c0_17 = arith.constant 0 : index
        %c0_18 = arith.constant 0 : index
        %43 = vector.load %arg4[%c0_16, %c0_17, %c0_18] : memref<1x8x128xf32, #tpu.memory_space<vmem>>, vector<1x8x128xf32>
        %44 = vector.shape_cast %43 : vector<1x8x128xf32> to vector<8x128xf32>
        %45 = vector.shape_cast %34 : vector<16x128xf32> to vector<2x8x128xf32>
        %cst_19 = arith.constant dense<0.000000e+00> : vector<8x128xf32>
        %46 = vector.multi_reduction <add>, %45, %cst_19 [0] : vector<2x8x128xf32> to vector<8x128xf32>
        %47 = arith.addf %44, %46 : vector<8x128xf32>
        %c0_20 = arith.constant 0 : index
        %c0_21 = arith.constant 0 : index
        %c0_22 = arith.constant 0 : index
        %48 = vector.load %arg4[%c0_20, %c0_21, %c0_22] : memref<1x8x128xf32, #tpu.memory_space<vmem>>, vector<1x8x128xf32>
        %49 = vector.shape_cast %48 : vector<1x8x128xf32> to vector<8x128xf32>
        %50 = vector.shape_cast %47 : vector<8x128xf32> to vector<1x8x128xf32>
        tpu.vector_store %arg4[%c0_20, %c0_21, %c0_22], %50 {strides = array<i32>} : memref<1x8x128xf32, #tpu.memory_space<vmem>>, vector<1x8x128xf32>,
      } else {
      }
      %c2048_i32_13 = arith.constant 2048 : i32
      %39 = arith.addi %10, %c2048_i32_13 : i32
      %c2048_i32_14 = arith.constant 2048 : i32
      %40 = arith.cmpi sgt, %39, %c2048_i32_14 : i32
      %41 = arith.extui %40 : i1 to i32
      %c0_i32_15 = arith.constant 0 : i32
      %42 = arith.cmpi ne, %41, %c0_i32_15 : i32
      scf.if %42 {
        %43 = tpu.iota {dimensions = array<i32: 0>} : vector<16x128xi32>
        %c128_i32_16 = arith.constant 128 : i32
        %44 = vector.broadcast %c128_i32_16 : i32 to vector<16x128xi32>
        %45 = arith.muli %43, %44 : vector<16x128xi32>
        %46 = vector.broadcast %10 : i32 to vector<16x128xi32>
        %47 = arith.addi %46, %45 : vector<16x128xi32>
        %48 = tpu.iota {dimensions = array<i32: 1>} : vector<16x128xi32>
        %49 = arith.addi %47, %48 : vector<16x128xi32>
        %c2048_i32_17 = arith.constant 2048 : i32
        %50 = vector.broadcast %c2048_i32_17 : i32 to vector<16x128xi32>
        %51 = arith.cmpi slt, %49, %50 : vector<16x128xi32>
        %cst_18 = arith.constant 0.000000e+00 : f32
        %52 = vector.broadcast %cst_18 : f32 to vector<16x128xf32>
        %53 = arith.select %51, %34, %52 : vector<16x128xi1>, vector<16x128xf32>
        %c0_19 = arith.constant 0 : index
        %c0_20 = arith.constant 0 : index
        %c0_21 = arith.constant 0 : index
        %54 = vector.load %arg4[%c0_19, %c0_20, %c0_21] : memref<1x8x128xf32, #tpu.memory_space<vmem>>, vector<1x8x128xf32>
        %55 = vector.shape_cast %54 : vector<1x8x128xf32> to vector<8x128xf32>
        %56 = vector.shape_cast %53 : vector<16x128xf32> to vector<2x8x128xf32>
        %cst_22 = arith.constant dense<0.000000e+00> : vector<8x128xf32>
        %57 = vector.multi_reduction <add>, %56, %cst_22 [0] : vector<2x8x128xf32> to vector<8x128xf32>
        %58 = arith.addf %55, %57 : vector<8x128xf32>
        %c0_23 = arith.constant 0 : index
        %c0_24 = arith.constant 0 : index
        %c0_25 = arith.constant 0 : index
        %59 = vector.load %arg4[%c0_23, %c0_24, %c0_25] : memref<1x8x128xf32, #tpu.memory_space<vmem>>, vector<1x8x128xf32>
        %60 = vector.shape_cast %59 : vector<1x8x128xf32> to vector<8x128xf32>
        %61 = vector.shape_cast %58 : vector<8x128xf32> to vector<1x8x128xf32>
        tpu.vector_store %arg4[%c0_23, %c0_24, %c0_25], %61 {strides = array<i32>} : memref<1x8x128xf32, #tpu.memory_space<vmem>>, vector<1x8x128xf32>,
      } else {
      }
    } else {
    }
    %c1_i32_5 = arith.constant 1 : i32
    return
  }
  func.func @transform_0(%arg0: i32, %arg1: i32) -> (i32, i32) {
    %c1_i32 = arith.constant 1 : i32
    %0 = arith.muli %arg0, %c1_i32 : i32
    %1 = arith.addi %0, %arg1 : i32
    %c0_i32 = arith.constant 0 : i32
    %2 = arith.minsi %1, %c0_i32 : i32
    %c0_i32_0 = arith.constant 0 : i32
    %c0_i32_1 = arith.constant 0 : i32
    return %2, %c0_i32_0 : i32, i32
  }
  func.func @transform_1(%arg0: i32, %arg1: i32) -> (i32, i32) {
    %c1_i32 = arith.constant 1 : i32
    %0 = arith.muli %arg0, %c1_i32 : i32
    %1 = arith.addi %0, %arg1 : i32
    %c0_i32 = arith.constant 0 : i32
    %2 = arith.minsi %1, %c0_i32 : i32
    %c0_i32_0 = arith.constant 0 : i32
    %c0_i32_1 = arith.constant 0 : i32
    return %2, %c0_i32_0 : i32, i32
  }
  func.func @transform_2(%arg0: i32, %arg1: i32) -> (i32, i32, i32) {
    %c0_i32 = arith.constant 0 : i32
    %c0_i32_0 = arith.constant 0 : i32
    %c0_i32_1 = arith.constant 0 : i32
    return %arg0, %c0_i32, %c0_i32_0 : i32, i32, i32
  }
}

</mosaic_0001>

<bundles_post_ra>
// kernel: tpu_custom_call.1
= control target key start
LH: loop header
LB: loop body
LE: loop exit
PB: predicated region body
PF: predicated region fallthrough
CT: control target
= control target key end

     0   :  { %7 = vsyncpa [#allocation3], 0  ;;  %s287_s0 = inlined_call_operand.hbm [shape: f32[16,128], index: 0, kind: input, shape index: {}]   ;;  %s288_s1 = inlined_call_operand.hbm [shape: f32[16,128], index: 1, kind: input, shape index: {}]   ;;  %s289_s2 = inlined_call_operand.hbm [shape: f32[1,8,128], index: 2, kind: output, shape index: {}]  }
   0x1   :  { %8 = vsyncpa [#allocation6], 0 }
   0x2   :  { %9 = vsyncpa [#allocation4], 0  ;;  %s258_s9 = smov [#allocation2]  }
   0x3   :  { %s21_s10 = sshll.u32 %s258_s9, 4  ;;  %s22_s10 = int_to_ptr.vmem [resolvable:$true] %s21_s10 }
   0x4   :  { %s200_s11 = scalar_lea.vmem %s22_s10, 256  ;;  %p205_p1 = scmp.lt.s32.totalorder %s22_s10, %s22_s10 }
   0x5   :  { %p201_p0 = scmp.ne.s32.totalorder %s22_s10, %s200_s11  ;;  %p206_p2 = scmp.lt.s32.totalorder %s200_s11, %s200_s11 }
   0x7   :  { %p207_p3 = por %p206_p2, %p205_p1 }
   0x9   :  { %p208_p4 = pnand %p207_p3, %p201_p0 }
   0xb   :  { %211 = shalt.err (!%p208_p4)
}
   0xc   :  { %s259_s12 = smov 128   ;;  %s260_s13 = smov 8  }
   0xd   :  { %27 = dma.hbm_to_vmem [thread:$0]  %s287_s0, 256, %s22_s10, [#allocation3], %s259_s12, %s259_s12, %s260_s13  }
   0xe   :  { %s261_s16 = smov [#allocation5]  }
   0xf   :  { %s39_s17 = sshll.u32 %s261_s16, 4  ;;  %s40_s17 = int_to_ptr.vmem [resolvable:$true] %s39_s17 }
  0x10   :  { %s220_s18 = scalar_lea.vmem %s40_s17, 256  ;;  %p225_p6 = scmp.lt.s32.totalorder %s40_s17, %s40_s17 }
  0x11   :  { %p221_p5 = scmp.ne.s32.totalorder %s40_s17, %s220_s18  ;;  %p226_p7 = scmp.lt.s32.totalorder %s220_s18, %s220_s18 }
  0x13   :  { %p227_p8 = por %p226_p7, %p225_p6 }
  0x15   :  { %p228_p9 = pnand %p227_p8, %p221_p5 }
  0x17   :  { %231 = shalt.err (!%p228_p9)
}
  0x18   :  { %45 = dma.hbm_to_vmem [thread:$0]  %s288_s1, 256, %s40_s17, [#allocation6], %s259_s12, %s259_s12, %s260_s13  }
  0x19   :  { %252 = dma.done.wait [#allocation3], 256  }
  0x1a   :  { %253 = vsyncadd [#allocation3], 4294967040 }
  0x1b   :  { %254 = dma.done.wait [#allocation6], 256  }
  0x1c   :  { %255 = vsyncadd [#allocation6], 4294967040  ;;  %v71_v0 = vld [vmem:[#allocation2] sm:$0xff]  ;;  %v72_v1 = vld [vmem:[#allocation2 + $0x8] sm:$0xff]  ;;  %s262_s0 = smov [#allocation7]  }
  0x1d   :  { %v75_v2 = vand.u32 2147483647, %v71_v0  ;;  %v76_v3 = vand.u32 2147483647, %v72_v1  ;;  %v73_v14 = vld [vmem:[#allocation5] sm:$0xff]  ;;  %v74_v15 = vld [vmem:[#allocation5 + $0x8] sm:$0xff] }
  0x1e   :  { %v83_v17 = vmax.f32 %v71_v0, 0.0  ;;  %v85_v18 = vmul.f32 %v73_v14, %v71_v0  ;;  %v84_v21 = vmax.f32 %v72_v1, 0.0  ;;  %v86_v22 = vmul.f32 %v74_v15, %v72_v1  ;;  %s160_s1 = sshll.u32 %s262_s0, 4  ;;  %s161_s1 = int_to_ptr.vmem [resolvable:$true] %s160_s1 }
  0x1f   :  { %v77_v4 = vsub.f32 0.0, %v75_v2  ;;  %v78_v5 = vsub.f32 0.0, %v76_v3  ;;  %s232_s21 = scalar_lea.vmem %s161_s1, 128  ;;  %p237_p11 = scmp.lt.s32.totalorder %s161_s1, %s161_s1 }
  0x20   :  { %v87_v26 = vsub.f32 %v83_v17, %v85_v18  ;;  %v88_v29 = vsub.f32 %v84_v21, %v86_v22  ;;  %p233_p10 = scmp.ne.s32.totalorder %s161_s1, %s232_s21  ;;  %p238_p12 = scmp.lt.s32.totalorder %s232_s21, %s232_s21 }
  0x21   :  { %v79_v6 = vmul.f32 1.442695, %v77_v4  ;;  %v81_v7 = vmul.f32 1.442695, %v78_v5 }
  0x22   :  { %p239_p13 = por %p238_p12, %p237_p11 }
  0x23   :  { %180 = vpow2.f32 %v79_v6 }
  0x24   :  { %182 = vpow2.f32 %v81_v7  ;;  %p240_p0 = pnand %p239_p13, %p233_p10 }
  0x30   :  { %v181_v8 = vpop.eup %180 }
  0x31   :  { %v183_v9 = vpop.eup %182  ;;  %v89_v10 = vadd.f32 1.0, %v181_v8  ;;  %v92_v12 = vmul.f32 -0.5, %v181_v8  ;;  %v95_v19 = vand.u32 2147483647, %v181_v8 }
  0x32   :  { %v98_v11 = vadd.f32 1.0, %v183_v9  ;;  %v101_v13 = vmul.f32 -0.5, %v183_v9  ;;  %v104_v23 = vand.u32 2147483647, %v183_v9 }
  0x33   :  { %184 = vlog2.f32 %v89_v10  ;;  %v93_v16 = vadd.f32 1.0, %v92_v12  ;;  %vm96_vm0 = vcmp.lt.f32.partialorder %v95_v19, 0.0004427343 }
  0x34   :  { %186 = vlog2.f32 %v98_v11  ;;  %v102_v20 = vadd.f32 1.0, %v101_v13  ;;  %vm105_vm1 = vcmp.lt.f32.partialorder %v104_v23, 0.0004427343 }
  0x35   :  { %v94_v24 = vmul.f32 %v181_v8, %v93_v16 }
  0x36   :  { %v103_v27 = vmul.f32 %v183_v9, %v102_v20 }
  0x40   :  { %v185_v25 = vpop.eup %184 }
  0x41   :  { %v187_v28 = vpop.eup %186  ;;  %v91_v30 = vmul.f32 0.6931472, %v185_v25 }
  0x42   :  { %v100_v31 = vmul.f32 0.6931472, %v187_v28 }
  0x43   :  { %v97_v32 = vsel %vm96_vm0, %v94_v24, %v91_v30 }
  0x44   :  { %v106_v33 = vsel %vm105_vm1, %v103_v27, %v100_v31  ;;  %v107_v34 = vadd.f32 %v97_v32, %v87_v26 }
  0x45   :  { %v108_v35 = vadd.f32 %v106_v33, %v88_v29 }
  0x46   :  { %v109_v36 = vsub.f32 0.0, %v107_v34 }
  0x47   :  { %v110_v37 = vsub.f32 0.0, %v108_v35 }
  0x48   :  { %v111_v38 = vmul.f32 1.442695, %v109_v36 }
  0x49   :  { %v113_v39 = vmul.f32 1.442695, %v110_v37 }
  0x4a   :  { %188 = vpow2.f32 %v111_v38 }
  0x4b   :  { %190 = vpow2.f32 %v113_v39 }
  0x57   :  { %v189_v40 = vpop.eup %188 }
  0x58   :  { %v191_v41 = vpop.eup %190  ;;  %v115_v42 = vsub.f32 1.0, %v189_v40 }
  0x59   :  { %v116_v43 = vsub.f32 1.0, %v191_v41 }
  0x5a   :  { %v117_v44 = vmul.f32 %v115_v42, %v115_v42 }
  0x5b   :  { %v118_v45 = vmul.f32 %v116_v43, %v116_v43 }
  0x5c   :  { %v119_v46 = vmul.f32 %v117_v44, %v107_v34 }
  0x5d   :  { %v120_v47 = vmul.f32 %v118_v45, %v108_v35 }
  0x5f   :  { %v127_v48 = vadd.f32 %v120_v47, %v119_v46 }
  0x61   :  { %129 = vst [vmem:[#allocation7] sm:$0xff] %v127_v48 }
  0x62   :  { %243 = shalt.err (!%p240_p0)
}
  0x63   :  { %163 = dma.vmem_to_hbm [thread:$0]  %s161_s1, 128, %s289_s2, [#allocation4]  }
  0x64   :  { %256 = dma.done.wait [#allocation4], 128  }
  0x65   :  { %257 = vsyncadd [#allocation4], 4294967168 }
  0x66   :  { %167 = vsyncpa [#allocation3], 1 }
  0x67   :  { %168 = vsyncpa [#allocation6], 1 }
  0x68   :  { %169 = vsyncpa [#allocation4], 1 }

</bundles_post_ra>
